<compile_context>
chip_gen: v7x
topology: tpu7x:2x2x1
jax: 0.10.0
libtpu: 0.0.40
codegen_flags: <defaults>
</compile_context>

<pallas_src>
import functools

import jax
import jax.numpy as jnp
from jax import lax
from jax.experimental import pallas as pl
from jax.experimental.pallas import tpu as pltpu


def _conv3x3_kernel(x_ref, w_ref, b_ref, o_ref, *, kh_taps, kw_taps, wp, lp_out):
    # x_ref: (Cin, Lp_in)        bf16, one zero-padded image, flattened hp*Wp + wp
    # w_ref: (KH*KW, Cout, Cin)  bf16, per-tap weight matrices
    # b_ref: (Cout, 1)           f32
    # o_ref: (Cout, Lp_out)      f32, lane m = h*Wp + w (padded row stride)
    acc = None
    for kh in range(kh_taps):
        for kw in range(kw_taps):
            off = kh * wp + kw                      # constant lane shift per tap
            x_sl = x_ref[:, pl.ds(off, lp_out)]     # (Cin, Lp_out) bf16
            tap = kh * kw_taps + kw
            p = jnp.dot(w_ref[tap], x_sl, preferred_element_type=jnp.float32)
            acc = p if acc is None else acc + p
    o_ref[...] = (acc + b_ref[...]).astype(o_ref.dtype)


def conv2d_3x3_pallas(x_nchw, weight, bias, *, padding=1):
    """x_nchw: (N, Cin, H, W); weight: (Cout, Cin, 3, 3); bias: (Cout,)."""
    N, Cin, H, W = x_nchw.shape
    Cout, Cin_w, KH, KW = weight.shape
    assert Cin == Cin_w
    Hp, Wp = H + 2 * padding, W + 2 * padding

    # Output uses the padded row stride Wp so every tap is a fixed lane offset.
    l_out = H * Wp
    lp_out = pl.cdiv(l_out, 128) * 128
    max_off = (KH - 1) * Wp + (KW - 1)
    lp_in = pl.cdiv(max(Hp * Wp, max_off + lp_out), 128) * 128

    # Lane-dense padded input (N, Cin, Lp_in) in bf16.
    x_pad = jnp.pad(x_nchw, ((0, 0), (0, 0), (padding, padding), (padding, padding)))
    x_flat = x_pad.reshape(N, Cin, Hp * Wp)
    x_flat = jnp.pad(x_flat, ((0, 0), (0, 0), (0, lp_in - Hp * Wp))).astype(jnp.bfloat16)

    # Per-tap weight matrices (KH*KW, Cout, Cin) in bf16; bias stays f32.
    w_taps = jnp.transpose(weight, (2, 3, 0, 1)).reshape(KH * KW, Cout, Cin)
    w_taps = w_taps.astype(jnp.bfloat16)
    b2 = bias.reshape(Cout, 1).astype(jnp.float32)

    kernel = functools.partial(
        _conv3x3_kernel, kh_taps=KH, kw_taps=KW, wp=Wp, lp_out=lp_out)

    flops = 2 * N * Cout * Cin * KH * KW * lp_out
    bytes_accessed = (N * Cin * lp_in * 2          # bf16 input
                      + KH * KW * Cout * Cin * 2   # bf16 weights
                      + Cout * 4                   # f32 bias
                      + N * Cout * lp_out * 4)     # f32 output

    out_flat = pl.pallas_call(
        kernel,
        out_shape=jax.ShapeDtypeStruct((N, Cout, lp_out), jnp.float32),
        grid=(N,),
        in_specs=[
            pl.BlockSpec((None, Cin, lp_in), lambda n: (n, 0, 0)),
            pl.BlockSpec((KH * KW, Cout, Cin), lambda n: (0, 0, 0)),
            pl.BlockSpec((Cout, 1), lambda n: (0, 0)),
        ],
        out_specs=pl.BlockSpec((None, Cout, lp_out), lambda n: (n, 0, 0)),
        compiler_params=pltpu.CompilerParams(
            dimension_semantics=("parallel",)),
        cost_estimate=pl.CostEstimate(flops=flops, transcendentals=0,
                                      bytes_accessed=bytes_accessed),
    )(x_flat, w_taps, b2)

    # Drop lane padding and the pad columns; result is already NCHW.
    out = out_flat[:, :, :l_out].reshape(N, Cout, H, Wp)[:, :, :, :W]
    return out


class ModelA:
    """JAX/Pallas equivalent of torch ModelA: Conv2d(3, 8, 3, stride=1, padding=1)."""

    def __init__(self, key):
        kw_key, kb_key = jax.random.split(key)
        Cout, Cin, KH, KW = 8, 3, 3, 3
        fan_in = Cin * KH * KW
        bound = 1.0 / jnp.sqrt(fan_in)
        # Deterministic init mirroring torch Conv2d default (uniform(-bound, bound)).
        self.weight = jax.random.uniform(kw_key, (Cout, Cin, KH, KW),
                                         jnp.float32, -bound, bound)
        self.bias = jax.random.uniform(kb_key, (Cout,), jnp.float32, -bound, bound)

    def __call__(self, x1):
        return conv2d_3x3_pallas(x1, self.weight, self.bias, padding=1)


if __name__ == "__main__":
    key = jax.random.PRNGKey(0)
    k_model, k_x = jax.random.split(key)

    model = ModelA(k_model)
    x1 = jax.random.normal(k_x, (2, 3, 10, 10), jnp.float32)  # NCHW

    out = jax.block_until_ready(model(x1))
    assert out.shape == (2, 8, 10, 10), out.shape

    # Reference: lax conv on the same bf16-rounded operands with f32 accumulation,
    # so only accumulation order differs from the kernel (bf16 MXU inputs, f32 acc).
    x_r = x1.astype(jnp.bfloat16).astype(jnp.float32)
    w_r = model.weight.astype(jnp.bfloat16).astype(jnp.float32)
    ref = lax.conv_general_dilated(
        x_r, w_r, window_strides=(1, 1), padding=((1, 1), (1, 1)),
        dimension_numbers=("NCHW", "OIHW", "NCHW"),
        precision=lax.Precision.HIGHEST)
    ref = ref + model.bias.reshape(1, 8, 1, 1)
    assert jnp.allclose(out, ref, atol=2e-3, rtol=2e-3), \
        float(jnp.max(jnp.abs(out - ref)))

    print("KERNEL_OK")
</pallas_src>

<mosaic_0001>
module attributes {stable_mosaic.version = 11 : i64} {
  func.func @_conv3x3_kernel(%arg0: i32, %arg1: memref<1x3x256xbf16, #tpu.memory_space<vmem>>, %arg2: memref<9x8x3xbf16, #tpu.memory_space<vmem>>, %arg3: memref<8x1xf32, #tpu.memory_space<vmem>>, %arg4: memref<1x8x128xf32, #tpu.memory_space<vmem>>) attributes {dimension_semantics = [#tpu.dimension_semantics<parallel>], iteration_bounds = array<i64: 2>, scalar_prefetch = 0 : i64, scratch_operands = 0 : i64, tpu.core_type = #tpu.core_type<tc>, window_params = [{transform_indices = @transform_0, window_bounds = array<i64: 1, 3, 256>}, {pipeline_mode = #tpu.pipeline_mode<synchronous>, transform_indices = @transform_1, window_bounds = array<i64: 9, 8, 3>}, {pipeline_mode = #tpu.pipeline_mode<synchronous>, transform_indices = @transform_2, window_bounds = array<i64: 8, 1>}, {transform_indices = @transform_3, window_bounds = array<i64: 1, 8, 128>}]} {
    %c0 = arith.constant 0 : index
    %c0_0 = arith.constant 0 : index
    %c0_1 = arith.constant 0 : index
    %0 = vector.load %arg1[%c0, %c0_0, %c0_1] : memref<1x3x256xbf16, #tpu.memory_space<vmem>>, vector<1x3x128xbf16>
    %1 = vector.shape_cast %0 : vector<1x3x128xbf16> to vector<3x128xbf16>
    %c0_2 = arith.constant 0 : index
    %c0_3 = arith.constant 0 : index
    %c0_4 = arith.constant 0 : index
    %2 = vector.load %arg2[%c0_2, %c0_3, %c0_4] : memref<9x8x3xbf16, #tpu.memory_space<vmem>>, vector<1x8x3xbf16>
    %3 = vector.shape_cast %2 : vector<1x8x3xbf16> to vector<8x3xbf16>
    %cst = arith.constant dense<0.000000e+00> : vector<8x128xf32>
    %4 = tpu.matmul %3, %1, %cst {dimension_numbers = #tpu.dot_dimension_numbers<[1], [0], [0], [1], [0, 0, 1, 1], [], []>} : vector<8x3xbf16>, vector<3x128xbf16>, vector<8x128xf32> -> vector<8x128xf32>
    %c0_5 = arith.constant 0 : index
    %c0_6 = arith.constant 0 : index
    %c1 = arith.constant 1 : index
    %5 = vector.load %arg1[%c0_5, %c0_6, %c1] : memref<1x3x256xbf16, #tpu.memory_space<vmem>>, vector<1x3x128xbf16>
    %6 = vector.shape_cast %5 : vector<1x3x128xbf16> to vector<3x128xbf16>
    %c1_7 = arith.constant 1 : index
    %c0_8 = arith.constant 0 : index
    %c0_9 = arith.constant 0 : index
    %7 = vector.load %arg2[%c1_7, %c0_8, %c0_9] : memref<9x8x3xbf16, #tpu.memory_space<vmem>>, vector<1x8x3xbf16>
    %8 = vector.shape_cast %7 : vector<1x8x3xbf16> to vector<8x3xbf16>
    %cst_10 = arith.constant dense<0.000000e+00> : vector<8x128xf32>
    %9 = tpu.matmul %8, %6, %cst_10 {dimension_numbers = #tpu.dot_dimension_numbers<[1], [0], [0], [1], [0, 0, 1, 1], [], []>} : vector<8x3xbf16>, vector<3x128xbf16>, vector<8x128xf32> -> vector<8x128xf32>
    %10 = arith.addf %4, %9 : vector<8x128xf32>
    %c0_11 = arith.constant 0 : index
    %c0_12 = arith.constant 0 : index
    %c2 = arith.constant 2 : index
    %11 = vector.load %arg1[%c0_11, %c0_12, %c2] : memref<1x3x256xbf16, #tpu.memory_space<vmem>>, vector<1x3x128xbf16>
    %12 = vector.shape_cast %11 : vector<1x3x128xbf16> to vector<3x128xbf16>
    %c2_13 = arith.constant 2 : index
    %c0_14 = arith.constant 0 : index
    %c0_15 = arith.constant 0 : index
    %13 = vector.load %arg2[%c2_13, %c0_14, %c0_15] : memref<9x8x3xbf16, #tpu.memory_space<vmem>>, vector<1x8x3xbf16>
    %14 = vector.shape_cast %13 : vector<1x8x3xbf16> to vector<8x3xbf16>
    %cst_16 = arith.constant dense<0.000000e+00> : vector<8x128xf32>
    %15 = tpu.matmul %14, %12, %cst_16 {dimension_numbers = #tpu.dot_dimension_numbers<[1], [0], [0], [1], [0, 0, 1, 1], [], []>} : vector<8x3xbf16>, vector<3x128xbf16>, vector<8x128xf32> -> vector<8x128xf32>
    %16 = arith.addf %10, %15 : vector<8x128xf32>
    %c0_17 = arith.constant 0 : index
    %c0_18 = arith.constant 0 : index
    %c12 = arith.constant 12 : index
    %17 = vector.load %arg1[%c0_17, %c0_18, %c12] : memref<1x3x256xbf16, #tpu.memory_space<vmem>>, vector<1x3x128xbf16>
    %18 = vector.shape_cast %17 : vector<1x3x128xbf16> to vector<3x128xbf16>
    %c3 = arith.constant 3 : index
    %c0_19 = arith.constant 0 : index
    %c0_20 = arith.constant 0 : index
    %19 = vector.load %arg2[%c3, %c0_19, %c0_20] : memref<9x8x3xbf16, #tpu.memory_space<vmem>>, vector<1x8x3xbf16>
    %20 = vector.shape_cast %19 : vector<1x8x3xbf16> to vector<8x3xbf16>
    %cst_21 = arith.constant dense<0.000000e+00> : vector<8x128xf32>
    %21 = tpu.matmul %20, %18, %cst_21 {dimension_numbers = #tpu.dot_dimension_numbers<[1], [0], [0], [1], [0, 0, 1, 1], [], []>} : vector<8x3xbf16>, vector<3x128xbf16>, vector<8x128xf32> -> vector<8x128xf32>
    %22 = arith.addf %16, %21 : vector<8x128xf32>
    %c0_22 = arith.constant 0 : index
    %c0_23 = arith.constant 0 : index
    %c13 = arith.constant 13 : index
    %23 = vector.load %arg1[%c0_22, %c0_23, %c13] : memref<1x3x256xbf16, #tpu.memory_space<vmem>>, vector<1x3x128xbf16>
    %24 = vector.shape_cast %23 : vector<1x3x128xbf16> to vector<3x128xbf16>
    %c4 = arith.constant 4 : index
    %c0_24 = arith.constant 0 : index
    %c0_25 = arith.constant 0 : index
    %25 = vector.load %arg2[%c4, %c0_24, %c0_25] : memref<9x8x3xbf16, #tpu.memory_space<vmem>>, vector<1x8x3xbf16>
    %26 = vector.shape_cast %25 : vector<1x8x3xbf16> to vector<8x3xbf16>
    %cst_26 = arith.constant dense<0.000000e+00> : vector<8x128xf32>
    %27 = tpu.matmul %26, %24, %cst_26 {dimension_numbers = #tpu.dot_dimension_numbers<[1], [0], [0], [1], [0, 0, 1, 1], [], []>} : vector<8x3xbf16>, vector<3x128xbf16>, vector<8x128xf32> -> vector<8x128xf32>
    %28 = arith.addf %22, %27 : vector<8x128xf32>
    %c0_27 = arith.constant 0 : index
    %c0_28 = arith.constant 0 : index
    %c14 = arith.constant 14 : index
    %29 = vector.load %arg1[%c0_27, %c0_28, %c14] : memref<1x3x256xbf16, #tpu.memory_space<vmem>>, vector<1x3x128xbf16>
    %30 = vector.shape_cast %29 : vector<1x3x128xbf16> to vector<3x128xbf16>
    %c5 = arith.constant 5 : index
    %c0_29 = arith.constant 0 : index
    %c0_30 = arith.constant 0 : index
    %31 = vector.load %arg2[%c5, %c0_29, %c0_30] : memref<9x8x3xbf16, #tpu.memory_space<vmem>>, vector<1x8x3xbf16>
    %32 = vector.shape_cast %31 : vector<1x8x3xbf16> to vector<8x3xbf16>
    %cst_31 = arith.constant dense<0.000000e+00> : vector<8x128xf32>
    %33 = tpu.matmul %32, %30, %cst_31 {dimension_numbers = #tpu.dot_dimension_numbers<[1], [0], [0], [1], [0, 0, 1, 1], [], []>} : vector<8x3xbf16>, vector<3x128xbf16>, vector<8x128xf32> -> vector<8x128xf32>
    %34 = arith.addf %28, %33 : vector<8x128xf32>
    %c0_32 = arith.constant 0 : index
    %c0_33 = arith.constant 0 : index
    %c24 = arith.constant 24 : index
    %35 = vector.load %arg1[%c0_32, %c0_33, %c24] : memref<1x3x256xbf16, #tpu.memory_space<vmem>>, vector<1x3x128xbf16>
    %36 = vector.shape_cast %35 : vector<1x3x128xbf16> to vector<3x128xbf16>
    %c6 = arith.constant 6 : index
    %c0_34 = arith.constant 0 : index
    %c0_35 = arith.constant 0 : index
    %37 = vector.load %arg2[%c6, %c0_34, %c0_35] : memref<9x8x3xbf16, #tpu.memory_space<vmem>>, vector<1x8x3xbf16>
    %38 = vector.shape_cast %37 : vector<1x8x3xbf16> to vector<8x3xbf16>
    %cst_36 = arith.constant dense<0.000000e+00> : vector<8x128xf32>
    %39 = tpu.matmul %38, %36, %cst_36 {dimension_numbers = #tpu.dot_dimension_numbers<[1], [0], [0], [1], [0, 0, 1, 1], [], []>} : vector<8x3xbf16>, vector<3x128xbf16>, vector<8x128xf32> -> vector<8x128xf32>
    %40 = arith.addf %34, %39 : vector<8x128xf32>
    %c0_37 = arith.constant 0 : index
    %c0_38 = arith.constant 0 : index
    %c25 = arith.constant 25 : index
    %41 = vector.load %arg1[%c0_37, %c0_38, %c25] : memref<1x3x256xbf16, #tpu.memory_space<vmem>>, vector<1x3x128xbf16>
    %42 = vector.shape_cast %41 : vector<1x3x128xbf16> to vector<3x128xbf16>
    %c7 = arith.constant 7 : index
    %c0_39 = arith.constant 0 : index
    %c0_40 = arith.constant 0 : index
    %43 = vector.load %arg2[%c7, %c0_39, %c0_40] : memref<9x8x3xbf16, #tpu.memory_space<vmem>>, vector<1x8x3xbf16>
    %44 = vector.shape_cast %43 : vector<1x8x3xbf16> to vector<8x3xbf16>
    %cst_41 = arith.constant dense<0.000000e+00> : vector<8x128xf32>
    %45 = tpu.matmul %44, %42, %cst_41 {dimension_numbers = #tpu.dot_dimension_numbers<[1], [0], [0], [1], [0, 0, 1, 1], [], []>} : vector<8x3xbf16>, vector<3x128xbf16>, vector<8x128xf32> -> vector<8x128xf32>
    %46 = arith.addf %40, %45 : vector<8x128xf32>
    %c0_42 = arith.constant 0 : index
    %c0_43 = arith.constant 0 : index
    %c26 = arith.constant 26 : index
    %47 = vector.load %arg1[%c0_42, %c0_43, %c26] : memref<1x3x256xbf16, #tpu.memory_space<vmem>>, vector<1x3x128xbf16>
    %48 = vector.shape_cast %47 : vector<1x3x128xbf16> to vector<3x128xbf16>
    %c8 = arith.constant 8 : index
    %c0_44 = arith.constant 0 : index
    %c0_45 = arith.constant 0 : index
    %49 = vector.load %arg2[%c8, %c0_44, %c0_45] : memref<9x8x3xbf16, #tpu.memory_space<vmem>>, vector<1x8x3xbf16>
    %50 = vector.shape_cast %49 : vector<1x8x3xbf16> to vector<8x3xbf16>
    %cst_46 = arith.constant dense<0.000000e+00> : vector<8x128xf32>
    %51 = tpu.matmul %50, %48, %cst_46 {dimension_numbers = #tpu.dot_dimension_numbers<[1], [0], [0], [1], [0, 0, 1, 1], [], []>} : vector<8x3xbf16>, vector<3x128xbf16>, vector<8x128xf32> -> vector<8x128xf32>
    %52 = arith.addf %46, %51 : vector<8x128xf32>
    %c0_47 = arith.constant 0 : index
    %c0_48 = arith.constant 0 : index
    %53 = vector.load %arg3[%c0_47, %c0_48] : memref<8x1xf32, #tpu.memory_space<vmem>>, vector<8x1xf32>
    %54 = vector.broadcast %53 : vector<8x1xf32> to vector<8x128xf32>
    %55 = arith.addf %52, %54 : vector<8x128xf32>
    %c0_49 = arith.constant 0 : index
    %c0_50 = arith.constant 0 : index
    %c0_51 = arith.constant 0 : index
    %56 = vector.load %arg4[%c0_49, %c0_50, %c0_51] : memref<1x8x128xf32, #tpu.memory_space<vmem>>, vector<1x8x128xf32>
    %57 = vector.shape_cast %56 : vector<1x8x128xf32> to vector<8x128xf32>
    %58 = vector.shape_cast %55 : vector<8x128xf32> to vector<1x8x128xf32>
    tpu.vector_store %arg4[%c0_49, %c0_50, %c0_51], %58 {strides = array<i32>} : memref<1x8x128xf32, #tpu.memory_space<vmem>>, vector<1x8x128xf32>,
    return
  }
  func.func @transform_0(%arg0: i32) -> (i32, i32, i32) {
    %c0_i32 = arith.constant 0 : i32
    %c0_i32_0 = arith.constant 0 : i32
    %c0_i32_1 = arith.constant 0 : i32
    return %arg0, %c0_i32, %c0_i32_0 : i32, i32, i32
  }
  func.func @transform_1(%arg0: i32) -> (i32, i32, i32) {
    %c0_i32 = arith.constant 0 : i32
    %c0_i32_0 = arith.constant 0 : i32
    %c0_i32_1 = arith.constant 0 : i32
    %c0_i32_2 = arith.constant 0 : i32
    return %c0_i32, %c0_i32_0, %c0_i32_1 : i32, i32, i32
  }
  func.func @transform_2(%arg0: i32) -> (i32, i32) {
    %c0_i32 = arith.constant 0 : i32
    %c0_i32_0 = arith.constant 0 : i32
    %c0_i32_1 = arith.constant 0 : i32
    return %c0_i32, %c0_i32_0 : i32, i32
  }
  func.func @transform_3(%arg0: i32) -> (i32, i32, i32) {
    %c0_i32 = arith.constant 0 : i32
    %c0_i32_0 = arith.constant 0 : i32
    %c0_i32_1 = arith.constant 0 : i32
    return %arg0, %c0_i32, %c0_i32_0 : i32, i32, i32
  }
}

</mosaic_0001>

<bundles_post_ra>
// kernel: tpu_custom_call.1
= control target key start
LH: loop header
LB: loop body
LE: loop exit
PB: predicated region body
PF: predicated region fallthrough
CT: control target
= control target key end

     0   :  { %8 = vsyncpa [#allocation3], 0  ;;  %s1258_s0 = inlined_call_operand.vmem [shape: bf16[2,3,256], index: 0, kind: input, shape index: {}]   ;;  %s1259_s1 = inlined_call_operand.vmem [shape: bf16[9,8,3], index: 1, kind: input, shape index: {}]   ;;  %s1260_s2 = inlined_call_operand.vmem [shape: f32[8,1], index: 2, kind: input, shape index: {}]   ;;  %s1261_s3 = inlined_call_operand.hbm [shape: f32[2,8,128], index: 3, kind: output, shape index: {}]  }
   0x1   :  { %10 = vsyncpa [#allocation3 + $0x1], 0  ;;  %s1081_s12 = smov 0   ;;  %s1083_s13 = smov 0  }
   0x2   :  { %s1085_s14 = smov 0   ;;  %s1087_s15 = smov 0  }
   0x3 LB: > { %s1102_s16 = sadd.s32 4294967295, %s1046_s15   ;;  %s823_s17 = sadd.s32 4294967294, %s1046_s15   ;;  %s1046_s15 = sphi %s1087_s15, %s1267_s15   ;;  %s1042_s14 = sphi %s1085_s14, %s1266_s14   ;;  %s1038_s13 = sphi %s1083_s13, %s1265_s13   ;;  %s1034_s12 = sphi %s1081_s12, %s1264_s12  }
   0x4   : > { %s1106_s18 = sadd.s32 1, %s1046_s15   ;;  %s91_s19 = sadd.s32 1, %s1042_s14 }
   0x5   : > { %s88_s20 = ssub.s32 %s1046_s15, %s1106_s18  ;;  %p101_p0 = scmp.ne.s32.totalorder %s1042_s14, %s1038_s13 }
   0x6   : > { %p89_p1 = scmp.eq.s32.totalorder %s88_s20, 0  ;;  %p102_p2 = scmp.eq.s32.totalorder %s1102_s16, 1 }
   0x7   : > { %p107_p3 = scmp.ne.s32.totalorder %s1038_s13, %s1034_s12  ;;  %p108_p4 = scmp.eq.s32.totalorder %s823_s17, 1 }
   0x8   : > { %s1117_s21 = scalar_select %p89_p1, %s1042_s14, %s91_s19  }
   0x9   : > { %p1119_p5 = por %p102_p2, %p101_p0  ;;  %p1123_p6 = por %p108_p4, %p107_p3 }
   0xa   : > { %p826_p7 = scmp.ge.s32.totalorder %s1046_s15, 1  ;;  %p140_p8 = scmp.lt.s32.totalorder %s1046_s15, 3 }
   0xc   : > { %p141_p9 = pnand %p826_p7, %p140_p8 }
   0xd   : > { %p164_p10 = scmp.lt.s32.totalorder (!%p141_p9), %s1102_s16, 1  ;;  %vm194_vm0 = vcmask (!%p141_p9), 1040384   ;;  %vm195_vm1 = vcmask (!%p141_p9), 1041408   ;;  %v1048_v0 = vmov (!%p141_p9), 65535   ;;  %v1049_v2 = vmov (!%p141_p9), 0.0   ;;  %s1051_s29 = smov (!%p141_p9), 126  }
   0xe   : > { %144 = sbr.rel (%p141_p9) target bundleno = 413 (0x19d), region = 32  ;;  %v196_v1 = vsel (!%p141_p9), %vm194_vm0, 4294967295, %v1048_v0  ;;  %878 = vmatprep.subr.bf16.mxu0 (!%p141_p9), %v1049_v2  ;;  %884 = vmatprep.subr.bf16.mxu1 (!%p141_p9), %v1049_v2  ;;  %vm1050_vm2 = vmmov (!%p141_p9), 0   ;;  %s1052_s30 = smov (!%p141_p9), 127   ;;  %vm190_vm3 = vcmask (!%p141_p9), 23552   ;;  %v742_v9 = vld [vmem:[%s1260_s2] sm:$0xff] (!%p141_p9) }
   0xf   : > { %880 = vmatprep.mubr.msk.bf16.mxu0 (!%p141_p9), %vm1050_vm2, %v1049_v2  ;;  %886 = vmatprep.mubr.msk.bf16.mxu1 (!%p141_p9), %vm1050_vm2, %v1049_v2  ;;  %v1140_v3 = vsel (!%p141_p9), %vm195_vm1, %v196_v1, 0  ;;  %v171_v8 = vld [vmem:[%s1259_s1] sm:$0xf] (!%p141_p9)  ;;  %s1053_s6 = smov (!%p141_p9), 116   ;;  %s1054_s7 = smov (!%p141_p9), 115   ;;  %v1059_v10 = vmov (!%p141_p9), 0  }
  0x10   : > { %s1055_s8 = smov (!%p141_p9), 114   ;;  %s1056_s9 = smov (!%p141_p9), 104   ;;  %983 = vset.pattern.permute.xlu0 (!%p141_p9), %v1059_v10  ;;  %vm303_vm4 = vcmask (!%p141_p9), 1031168   ;;  %vm188_vm5 = vcmask (!%p141_p9), 1039360   ;;  %vm368_vm6 = vcmask (!%p141_p9), 949248   ;;  %vm433_vm7 = vcmask (!%p141_p9), 941056  }
  0x11   : > { %s1057_s10 = smov (!%p141_p9), 103   ;;  %s1058_s11 = smov (!%p141_p9), 102   ;;  %v830_v19 = vld [vmem:[%s1259_s1 + $0x4] sm:$0xf] (!%p141_p9)  ;;  %v837_v26 = vld [vmem:[%s1259_s1 + $0xc] sm:$0xf] (!%p141_p9) }
  0x12   : > { %vm498_vm8 = vcmask (!%p141_p9), 932864   ;;  %v834_v29 = vld [vmem:[%s1259_s1 + $0x8] sm:$0xf] (!%p141_p9)  ;;  %vm563_vm9 = vcmask (!%p141_p9), 850944   ;;  %v843_v36 = vld [vmem:[%s1259_s1 + $0x14] sm:$0xf] (!%p141_p9) }
  0x13   : > { %vm628_vm10 = vcmask (!%p141_p9), 842752   ;;  %v840_v39 = vld [vmem:[%s1259_s1 + $0x10] sm:$0xf] (!%p141_p9)  ;;  %vm693_vm11 = vcmask (!%p141_p9), 834560   ;;  %v849_v46 = vld [vmem:[%s1259_s1 + $0x1c] sm:$0xf] (!%p141_p9) }
  0x14   : > { %v846_v49 = vld [vmem:[%s1259_s1 + $0x18] sm:$0xf] (!%p141_p9)  ;;  %v852_v50 = vld [vmem:[%s1259_s1 + $0x20] sm:$0xf] (!%p141_p9)  ;;  %s161_s17 = sand.u32 (!%p141_p9), 1, %s1038_s13   ;;  %s856_s20 = sshll.u32 (!%p141_p9), %s1102_s16, 7 }
  0x15   : > { %s165_s24 = scalar_select %p164_p10, %s1102_s16, 1 }
  0x16   : > { %s827_s19 = sshll.u32 %s161_s17, 3 }
  0x17   : > { %s859_s25 = sshll.u32 %s165_s24, 2  ;;  %s163_s24 = scalar_lea.vmem [#allocation2], %s827_s19 }
  0x18   : > { %s168_s28 = scalar_lea.vmem %s1258_s0, %s859_s25  ;;  %s764_s25 = sshll.u32 %s163_s24, 4  ;;  %s1218_s25 = int_to_ptr.vmem [resolvable:$true] %s764_s25 }
  0x19   : > { %v835_v4 = vld.sshfl [vmem:[%s168_s28] sm:$0x33 pattern:$0x76325410]  ;;  %s984_s16 = scalar_lea.vmem %s1218_s25, 128 }
  0x1a   : > { %299 = vrot.lane.b32.xlu1 %v835_v4, %s1051_s29  ;;  %v298_v5 = vcombine.high %v835_v4, %v835_v4  ;;  %184 = vrot.lane.b32.xlu0 %v835_v4, %s1052_s30  ;;  %v170_v6 = vld [vmem:[%s168_s28] sm:$0x3]  ;;  %s1216_s28 = scalar_lea.hbm %s1261_s3, %s856_s20  ;;  %p985_p11 = scmp.ne.s32.totalorder %s1218_s25, %s984_s16 }
  0x1b   : > { %v245_v7 = vand.u32 %v1140_v3, %v170_v6 }
  0x1c   : > { %p986_p12 = pnand %p985_p11, %p1119_p5 }
  0x1d   : > { %885 = vmatpush3.bf16.msra.mxu1 %v245_v7 }
  0x1e   : > { %301 = vrot.lane.b32.xlu1 %v298_v5, %s1051_s29  ;;  %186 = vrot.lane.b32.xlu0 %v298_v5, %s1052_s30  ;;  %s751_s29 = scalar_lea.sflag [#allocation3], %s161_s17  ;;  %p987_p13 = pneg %p986_p12 }
  0x1f   : > { %896 = vmatprep.subr.bf16.mxu1 %v1049_v2  ;;  %s1060_s30 = smov [#allocation2]  }
  0x20   : > { %887 = vmatmul.mubr.msk.bf16.vlgmr.msra.gmra.mrb[0].mxu1 %vm190_vm3, %v171_v8  ;;  %s988_s4 = sshll.u32 %s1060_s30, 4  ;;  %s989_s4 = int_to_ptr.vmem [resolvable:$false] %s988_s4 }
  0x21   : > { %898 = vmatprep.mubr.msk.bf16.mxu1 %vm1050_vm2, %v1049_v2  ;;  %s990_s5 = scalar_lea.vmem %s989_s4, 256  ;;  %p991_p0 = scmp.lt.s32.totalorder %s1218_s25, %s989_s4 }
  0x22   : > { %366 = vrot.lane.b32.xlu1 %v298_v5, %s1053_s6  ;;  %364 = vrot.lane.b32.xlu0 %v835_v4, %s1053_s6  ;;  %p992_p1 = scmp.lt.s32.totalorder %s990_s5, %s984_s16 }
  0x24   : > { %p993_p2 = por %p992_p1, %p991_p0 }
  0x26   : > { %431 = vrot.lane.b32.xlu1 %v298_v5, %s1054_s7  ;;  %429 = vrot.lane.b32.xlu0 %v835_v4, %s1054_s7  ;;  %p994_p3 = pnand %p993_p2, %p987_p13 }
  0x2a   : > { %496 = vrot.lane.b32.xlu1 %v298_v5, %s1055_s8  ;;  %494 = vrot.lane.b32.xlu0 %v835_v4, %s1055_s8 }
  0x2e   : > { %561 = vrot.lane.b32.xlu1 %v298_v5, %s1056_s9  ;;  %559 = vrot.lane.b32.xlu0 %v835_v4, %s1056_s9 }
  0x32   : > { %626 = vrot.lane.b32.xlu1 %v298_v5, %s1057_s10  ;;  %624 = vrot.lane.b32.xlu0 %v835_v4, %s1057_s10 }
  0x36   : > { %691 = vrot.lane.b32.xlu1 %v298_v5, %s1058_s11  ;;  %689 = vrot.lane.b32.xlu0 %v835_v4, %s1058_s11 }
  0x3a   : > { %745 = vperm.xlu0 %983, %v742_v9  }
  0x8c   : > { %v300_v11 = vpop.permute.xlu1 %299  ;;  %v185_v12 = vpop.permute.xlu0 %184 }
  0x90   : > { %v302_v13 = vpop.permute.xlu1 %301  ;;  %v187_v14 = vpop.permute.xlu0 %186 }
  0x91   : > { %v304_v15 = vsel %vm303_vm4, %v300_v11, %v302_v13  ;;  %v189_v16 = vsel %vm188_vm5, %v185_v12, %v187_v14 }
  0x92   : > { %v199_v17 = vand.u32 %v1140_v3, %v189_v16  ;;  %v309_v18 = vand.u32 %v304_v15, %v1140_v3 }
  0x94   : > { %879 = vmatpush3.bf16.msra.mxu0 %v199_v17  ;;  %v367_v20 = vpop.permute.xlu1 %366  ;;  %v365_v21 = vpop.permute.xlu0 %364 }
  0x95   : > { %890 = vmatprep.subr.bf16.mxu0 %v1049_v2  ;;  %v369_v22 = vsel %vm368_vm6, %v365_v21, %v367_v20 }
  0x96   : > { %v374_v23 = vand.u32 %v369_v22, %v1140_v3 }
  0x97   : > { %881 = vmatmul.mubr.msk.bf16.vlgmr.msra.gmra.mrb[0].mxu0 %vm190_vm3, %v830_v19 }
  0x98   : > { %891 = vmatpush3.bf16.msra.mxu0 %v309_v18  ;;  %v432_v24 = vpop.permute.xlu1 %431  ;;  %v430_v25 = vpop.permute.xlu0 %429  ;;  %897 = vmatpush3.bf16.msra.mxu1 %v374_v23 }
  0x99   : > { %v434_v27 = vsel %vm433_vm7, %v430_v25, %v432_v24  ;;  %892 = vmatprep.mubr.msk.bf16.mxu0 %vm1050_vm2, %v1049_v2  ;;  %902 = vmatprep.subr.bf16.mxu0 %v1049_v2 }
  0x9a   : > { %908 = vmatprep.subr.bf16.mxu1 %v1049_v2  ;;  %v439_v28 = vand.u32 %v434_v27, %v1140_v3 }
  0x9b   : > { %899 = vmatmul.mubr.msk.bf16.vlgmr.msra.gmra.mrb[4].mxu1 %vm190_vm3, %v837_v26 }
  0x9c   : > { %v497_v30 = vpop.permute.xlu1 %496  ;;  %v495_v31 = vpop.permute.xlu0 %494  ;;  %910 = vmatprep.mubr.msk.bf16.mxu1 %vm1050_vm2, %v1049_v2 }
  0x9d   : > { %v499_v32 = vsel %vm498_vm8, %v495_v31, %v497_v30 }
  0x9e   : > { %v504_v33 = vand.u32 %v499_v32, %v1140_v3 }
  0x9f   : > { %893 = vmatmul.mubr.msk.bf16.vlgmr.msra.gmra.mrb[4].mxu0 %vm190_vm3, %v834_v29 }
  0xa0   : > { %903 = vmatpush3.bf16.msra.mxu0 %v439_v28  ;;  %v562_v34 = vpop.permute.xlu1 %561  ;;  %v560_v35 = vpop.permute.xlu0 %559  ;;  %909 = vmatpush3.bf16.msra.mxu1 %v504_v33 }
  0xa1   : > { %v564_v37 = vsel %vm563_vm9, %v560_v35, %v562_v34  ;;  %904 = vmatprep.mubr.msk.bf16.mxu0 %vm1050_vm2, %v1049_v2  ;;  %914 = vmatprep.subr.bf16.mxu0 %v1049_v2 }
  0xa2   : > { %920 = vmatprep.subr.bf16.mxu1 %v1049_v2  ;;  %v569_v38 = vand.u32 %v564_v37, %v1140_v3 }
  0xa3   : > { %911 = vmatmul.mubr.msk.bf16.vlgmr.msra.gmra.mrb[8].mxu1 %vm190_vm3, %v843_v36 }
  0xa4   : > { %v627_v40 = vpop.permute.xlu1 %626  ;;  %v625_v41 = vpop.permute.xlu0 %624  ;;  %922 = vmatprep.mubr.msk.bf16.mxu1 %vm1050_vm2, %v1049_v2 }
  0xa5   : > { %v629_v42 = vsel %vm628_vm10, %v625_v41, %v627_v40 }
  0xa6   : > { %v634_v43 = vand.u32 %v629_v42, %v1140_v3 }
  0xa7   : > { %905 = vmatmul.mubr.msk.bf16.vlgmr.msra.gmra.mrb[8].mxu0 %vm190_vm3, %v840_v39 }
  0xa8   : > { %915 = vmatpush3.bf16.msra.mxu0 %v569_v38  ;;  %v692_v44 = vpop.permute.xlu1 %691  ;;  %v690_v45 = vpop.permute.xlu0 %689  ;;  %921 = vmatpush3.bf16.msra.mxu1 %v634_v43 }
  0xa9   : > { %v694_v47 = vsel %vm693_vm11, %v690_v45, %v692_v44  ;;  %916 = vmatprep.mubr.msk.bf16.mxu0 %vm1050_vm2, %v1049_v2  ;;  %926 = vmatprep.subr.bf16.mxu0 %v1049_v2 }
  0xaa   : > { %v699_v48 = vand.u32 %v694_v47, %v1140_v3 }
  0xab   : > { %923 = vmatmul.mubr.msk.bf16.vlgmr.msra.gmra.mrb[12].mxu1 %vm190_vm3, %v849_v46 }
  0xaf   : > { %917 = vmatmul.mubr.msk.bf16.vlgmr.msra.gmra.mrb[12].mxu0 %vm190_vm3, %v846_v49 }
  0xb0   : > { %927 = vmatpush3.bf16.msra.mxu0 %v699_v48  ;;  %928 = vmatprep.mubr.msk.bf16.mxu0 %vm1050_vm2, %v1049_v2 }
  0xb7   : > { %929 = vmatmul.mubr.msk.bf16.vlgmr.msra.gmra.mrb[16].mxu0 %vm190_vm3, %v852_v50 }
  0xb9   : > { %v746_v27 = vpop.permute.xlu0 %745 }
  0xf3   : > { %v281_v51 = vpop.f32.mrb[0].mxu1 }
  0xf4   : > { %v888_v52 = vpop.f32.mrb[1].mxu1 }
  0xf5   : > { %v284_v53 = vpop.f32.mrb[2].mxu1 }
  0xf6   : > { %v889_v54 = vpop.f32.mrb[3].mxu1 }
 0x16a   : > { %v235_v55 = vpop.f32.mrb[0].mxu0 }
 0x16b   : > { %v882_v56 = vpop.f32.mrb[1].mxu0  ;;  %v282_v57 = vadd.f32 %v281_v51, %v235_v55 }
 0x16c   : > { %v238_v58 = vpop.f32.mrb[2].mxu0 }
 0x16d   : > { %v883_v59 = vpop.f32.mrb[3].mxu0 }
 0x16e   : > { %v410_v60 = vpop.f32.mrb[4].mxu1 }
 0x16f   : > { %v900_v61 = vpop.f32.mrb[5].mxu1 }
 0x170   : > { %v413_v62 = vpop.f32.mrb[6].mxu1 }
 0x171   : > { %v901_v63 = vpop.f32.mrb[7].mxu1 }
 0x172   : > { %v345_v0 = vpop.f32.mrb[4].mxu0 }
 0x173   : > { %v351_v1 = vadd.f32 %v345_v0, %v282_v57  ;;  %v894_v2 = vpop.f32.mrb[5].mxu0 }
 0x174   : > { %v348_v3 = vpop.f32.mrb[6].mxu0 }
 0x175   : > { %v416_v4 = vadd.f32 %v410_v60, %v351_v1  ;;  %v895_v5 = vpop.f32.mrb[7].mxu0 }
 0x176   : > { %v540_v6 = vpop.f32.mrb[8].mxu1 }
 0x177   : > { %v912_v7 = vpop.f32.mrb[9].mxu1 }
 0x178   : > { %v543_v8 = vpop.f32.mrb[10].mxu1 }
 0x179   : > { %v913_v9 = vpop.f32.mrb[11].mxu1 }
 0x17a   : > { %v475_v10 = vpop.f32.mrb[8].mxu0 }
 0x17b   : > { %v481_v11 = vadd.f32 %v475_v10, %v416_v4  ;;  %v906_v12 = vpop.f32.mrb[9].mxu0 }
 0x17c   : > { %v478_v13 = vpop.f32.mrb[10].mxu0 }
 0x17d   : > { %v546_v14 = vadd.f32 %v540_v6, %v481_v11  ;;  %v907_v15 = vpop.f32.mrb[11].mxu0 }
 0x17e   : > { %v670_v16 = vpop.f32.mrb[12].mxu1 }
 0x17f   : > { %v924_v17 = vpop.f32.mrb[13].mxu1 }
 0x180   : > { %v673_v18 = vpop.f32.mrb[14].mxu1 }
 0x181   : > { %v925_v19 = vpop.f32.mrb[15].mxu1 }
 0x182   : > { %v605_v20 = vpop.f32.mrb[12].mxu0 }
 0x183   : > { %v611_v21 = vadd.f32 %v605_v20, %v546_v14  ;;  %v918_v22 = vpop.f32.mrb[13].mxu0 }
 0x184   : > { %v608_v23 = vpop.f32.mrb[14].mxu0 }
 0x185   : > { %v676_v24 = vadd.f32 %v670_v16, %v611_v21  ;;  %v919_v25 = vpop.f32.mrb[15].mxu0 }
 0x18a   : > { %v735_v26 = vpop.f32.mrb[16].mxu0 }
 0x18b   : > { %v741_v28 = vadd.f32 %v735_v26, %v676_v24  ;;  %v930_v29 = vpop.f32.mrb[17].mxu0 }
 0x18c   : > { %v738_v30 = vpop.f32.mrb[18].mxu0 }
 0x18d   : > { %v748_v31 = vadd.f32 %v746_v27, %v741_v28  ;;  %v931_v32 = vpop.f32.mrb[19].mxu0 }
 0x18f   : > { %749 = vst [vmem:[%s163_s24] sm:$0xff] %v748_v31 }
 0x190   : > { %997 = shalt.err (!%p994_p3)
}
 0x191   : > { %s998_s6 = scalar_lea.hbm %s1216_s28, 128  ;;  %s1002_s9 = scalar_lea.hbm %s1261_s3, 256 }
 0x192   : > { %p999_p4 = scmp.ne.s32.totalorder %s1216_s28, %s998_s6  ;;  %p1003_p9 = scmp.lt.u32.totalorder %s1216_s28, %s1261_s3 }
 0x193   : > { %p1004_p10 = scmp.lt.u32.totalorder %s1002_s9, %s998_s6  ;;  %p1006_p12 = scmp.lt.u32.totalorder %s998_s6, %s1216_s28 }
 0x194   : > { %p1000_p7 = pnand %p999_p4, %p1119_p5 }
 0x195   : > { %p1005_p11 = por %p1004_p10, %p1003_p9 }
 0x196   : > { %p1001_p8 = pneg %p1000_p7 }
 0x197   : > { %p1007_p13 = por %p1006_p12, %p1005_p11 }
 0x199   : > { %p1008_p0 = pnand %p1007_p13, %p1001_p8 }
 0x19b   : > { %1011 = shalt.err (!%p1008_p0)
}
 0x19c   : > { %932 = dma.vmem_to_hbm [thread:$0]  (%p1119_p5), %s1218_s25, 128, %s1216_s28, %s751_s29  }
 0x19d PF: > { %p938_p1 = scmp.ge.s32.totalorder %s1046_s15, 2  ;;  %s776_s17 = sand.u32 1, %s1034_s12  }
 0x19e   : > { %s777_s19 = scalar_lea.sflag [#allocation3], %s776_s17 }
 0x19f   : > { %p935_p2 = pnand %p938_p1, %p1123_p6 }
 0x1a1   : > { %1029 = dma.done.wait (!%p935_p2), %s777_s19, 128  }
 0x1a2   : > { %1031 = vsyncadd (!%p935_p2), %s777_s19, 4294967168  ;;  %p13_p3 = scmp.ge.s32.totalorder %s1106_s18, 4   ;;  %s1264_s12 = smov %s1038_s13 }
 0x1a3   : > { %s1265_s13 = smov %s1042_s14  ;;  %s1266_s14 = smov %s1117_s21 }
 0x1a4   : > { %s1267_s15 = smov %s1106_s18  ;;  %15 = sbr.rel (!%p13_p3) target bundleno = 3 (0x3), region = 75 }
 0x1ab   :  { %782 = vsyncpa [#allocation3], 1 }
 0x1ac   :  { %784 = vsyncpa [#allocation3 + $0x1], 1 }

</bundles_post_ra>
